<compile_context>
chip_gen: v7x
topology: tpu7x:2x2x1
jax: 0.10.0
libtpu: 0.0.40
codegen_flags: <defaults>
</compile_context>

<pallas_src>
import functools

import jax
import jax.numpy as jnp
from jax.experimental import pallas as pl
from jax.experimental.pallas import tpu as pltpu

LN_EPS = 1e-5  # nn.LayerNorm default


def _layer_norm(h, gamma, beta):
    # f32 VPU math; rsqrt matches PyTorch's internal formulation.
    mu = jnp.mean(h, axis=-1, keepdims=True)
    var = jnp.mean((h - mu) ** 2, axis=-1, keepdims=True)
    return (h - mu) * jax.lax.rsqrt(var + LN_EPS) * gamma + beta


def encoder_block_kernel(
    x_ref,      # (Bt, S, E)
    wq_ref,     # (E, E)  fused per-head Q weights, pre-scaled by 1/sqrt(Dh)
    wk_ref,     # (E, E)
    wv_ref,     # (E, E)
    wo_ref,     # (E, E)
    g1_ref,     # (1, E) LayerNorm1 gamma
    b1_ref,     # (1, E) LayerNorm1 beta
    w1_ref,     # (E, Hidden) FF first linear weight
    fb1_ref,    # (1, Hidden) FF first linear bias
    w2_ref,     # (Hidden, E) FF second linear weight
    fb2_ref,    # (1, E) FF second linear bias
    g2_ref,     # (1, E) LayerNorm2 gamma
    b2_ref,     # (1, E) LayerNorm2 beta
    o_ref,      # (Bt, S, E)
    *,
    n_head,
    compute_dtype,
):
    bt, s, e = x_ref.shape
    dh = e // n_head
    t = bt * s

    x = x_ref[...].astype(jnp.float32)           # residual path stays f32
    x2d = x.reshape(t, e)                        # (T, E), T = Bt*S
    xm = x2d.astype(compute_dtype)

    # Fused, lane-dense QKV projections on the flattened token slab (MXU, f32 acc).
    q = jnp.dot(xm, wq_ref[...].astype(compute_dtype), preferred_element_type=jnp.float32)
    k = jnp.dot(xm, wk_ref[...].astype(compute_dtype), preferred_element_type=jnp.float32)
    v = jnp.dot(xm, wv_ref[...].astype(compute_dtype), preferred_element_type=jnp.float32)

    qb = q.reshape(bt, s, e)
    kb = k.reshape(bt, s, e)
    vb = v.reshape(bt, s, e)

    # TODO(synk): attention mask path (masked_fill_ with -inf) not implemented; the
    #             reference forward is exercised with mask=None.
    attn_out = jnp.zeros((t, e), jnp.float32)
    for h in range(n_head):                      # static unroll (n_head is small)
        lo = h * dh
        qh = qb[:, :, lo:lo + dh]                # (Bt, S, Dh)
        kh = kb[:, :, lo:lo + dh]
        vh = vb[:, :, lo:lo + dh]
        # 1/sqrt(Dh) already folded into Wq, so no per-element sim scaling here.
        sim = jnp.einsum("bqd,bkd->bqk",
                         qh.astype(compute_dtype), kh.astype(compute_dtype),
                         preferred_element_type=jnp.float32)          # (Bt, S, S)
        sim = sim - jnp.max(sim, axis=-1, keepdims=True)              # f32 softmax
        ez = jnp.exp(sim)
        p = ez * pl.reciprocal(jnp.sum(ez, axis=-1, keepdims=True), approx=False)
        ctx = jnp.einsum("bqk,bkd->bqd",
                         p.astype(compute_dtype), vh.astype(compute_dtype),
                         preferred_element_type=jnp.float32)          # (Bt, S, Dh)
        # Fold this head straight into the output projection — no concatenate:
        #   mha @ Wo == sum_h ctx_h @ Wo[h*Dh:(h+1)*Dh, :]
        attn_out = attn_out + jnp.dot(
            ctx.reshape(t, dh).astype(compute_dtype),
            wo_ref[lo:lo + dh, :].astype(compute_dtype),
            preferred_element_type=jnp.float32)

    # Residual + LayerNorm 1 (f32).
    h1 = _layer_norm(attn_out + x2d, g1_ref[...], b1_ref[...])        # (T, E)

    # FeedForward: Linear(E, H*E) -> ReLU -> Linear(H*E, E), f32 accumulation.
    f = jnp.dot(h1.astype(compute_dtype), w1_ref[...].astype(compute_dtype),
                preferred_element_type=jnp.float32) + fb1_ref[...]
    f = jnp.maximum(f, 0.0)
    f = jnp.dot(f.astype(compute_dtype), w2_ref[...].astype(compute_dtype),
                preferred_element_type=jnp.float32) + fb2_ref[...]

    # Residual + LayerNorm 2.
    y = _layer_norm(f + h1, g2_ref[...], b2_ref[...])
    o_ref[...] = y.reshape(bt, s, e).astype(o_ref.dtype)


def encoder_block(x, params, *, use_bf16_matmul=False, batch_block=None):
    B, S, E = x.shape
    H, _, Dh = params["wq"].shape
    Hidden = params["w1"].shape[1]

    bt = B if batch_block is None else batch_block
    assert B % bt == 0, "batch_block must divide batch"

    # Fuse per-head (E, Dh) projection weights into lane-dense (E, H*Dh == E) matrices
    # and fold the 1/sqrt(head_dim) attention scale into Wq (done once, wrapper-side).
    inv_sqrt_scale = 1.0 / jnp.sqrt(jnp.float32(Dh))
    wq_f = jnp.transpose(params["wq"], (1, 0, 2)).reshape(E, H * Dh) * inv_sqrt_scale
    wk_f = jnp.transpose(params["wk"], (1, 0, 2)).reshape(E, H * Dh)
    wv_f = jnp.transpose(params["wv"], (1, 0, 2)).reshape(E, H * Dh)
    wo, w1, w2 = params["wo"], params["w1"], params["w2"]

    compute_dtype = jnp.bfloat16 if use_bf16_matmul else jnp.float32
    if use_bf16_matmul:
        # bf16 matmul operands (MXU-native on v6e/v7x) + halved weight DMA bytes.
        wq_f = wq_f.astype(jnp.bfloat16)
        wk_f = wk_f.astype(jnp.bfloat16)
        wv_f = wv_f.astype(jnp.bfloat16)
        wo, w1, w2 = (wo.astype(jnp.bfloat16), w1.astype(jnp.bfloat16),
                      w2.astype(jnp.bfloat16))

    kernel = functools.partial(encoder_block_kernel,
                               n_head=H, compute_dtype=compute_dtype)

    def full(shape):
        nd = len(shape)
        return pl.BlockSpec(shape, lambda b, _nd=nd: (0,) * _nd)

    # NOTE: at realistic E/Hidden (esp. v7x's 64 MiB VMEM) w1/w2 would need a K-tiled
    # grid axis or single-buffered bf16 residency + explicit vmem_limit_bytes.
    return pl.pallas_call(
        kernel,
        out_shape=jax.ShapeDtypeStruct((B, S, E), x.dtype),
        grid_spec=pltpu.PrefetchScalarGridSpec(
            num_scalar_prefetch=0,
            # Whole batch per step by default (single iteration, no per-step overhead);
            # on v7x set batch_block=B//2 so the parallel axis shards over 2 TCs.
            grid=(B // bt,),
            in_specs=[
                pl.BlockSpec((bt, S, E), lambda b: (b, 0, 0)),   # x
                full((E, E)), full((E, E)), full((E, E)),        # fused wq/wk/wv
                full((E, E)),                                    # wo
                full((1, E)), full((1, E)),                      # ln1 gamma/beta
                full((E, Hidden)), full((1, Hidden)),            # ff w1 / b1
                full((Hidden, E)), full((1, E)),                 # ff w2 / b2
                full((1, E)), full((1, E)),                      # ln2 gamma/beta
            ],
            out_specs=pl.BlockSpec((bt, S, E), lambda b: (b, 0, 0)),
        ),
        compiler_params=pltpu.CompilerParams(
            dimension_semantics=("parallel",),
        ),
    )(
        x,
        wq_f, wk_f, wv_f, wo,
        params["g1"], params["b1"],
        w1, params["fb1"], w2, params["fb2"],
        params["g2"], params["b2"],
    )


def encoder_block_ref(x, params):
    """Pure-JAX reference mirroring the PyTorch forward (per-head weights)."""
    H, _, Dh = params["wq"].shape
    heads = []
    for i in range(H):
        q = x @ params["wq"][i]
        k = x @ params["wk"][i]
        v = x @ params["wv"][i]
        sim = jnp.einsum("bsd,btd->bst", q, k) / jnp.sqrt(jnp.float32(Dh))
        p = jax.nn.softmax(sim, axis=-1)
        heads.append(jnp.einsum("bst,btd->bsd", p, v))
    mha = jnp.concatenate(heads, axis=-1) @ params["wo"]

    def ln(h, g, b):
        mu = jnp.mean(h, axis=-1, keepdims=True)
        var = jnp.mean((h - mu) ** 2, axis=-1, keepdims=True)
        return (h - mu) / jnp.sqrt(var + LN_EPS) * g + b

    h = ln(mha + x, params["g1"], params["b1"])
    f = jnp.maximum(h @ params["w1"] + params["fb1"], 0.0) @ params["w2"] + params["fb2"]
    return ln(f + h, params["g2"], params["b2"])


def make_params(key, emb_dim, n_head):
    head_dim = emb_dim // n_head
    hidden = n_head * emb_dim
    ks = jax.random.split(key, 12)
    s = 0.1
    return {
        "wq": s * jax.random.normal(ks[0], (n_head, emb_dim, head_dim), jnp.float32),
        "wk": s * jax.random.normal(ks[1], (n_head, emb_dim, head_dim), jnp.float32),
        "wv": s * jax.random.normal(ks[2], (n_head, emb_dim, head_dim), jnp.float32),
        "wo": s * jax.random.normal(ks[3], (emb_dim, emb_dim), jnp.float32),
        "g1": 1.0 + 0.05 * jax.random.normal(ks[4], (1, emb_dim), jnp.float32),
        "b1": 0.05 * jax.random.normal(ks[5], (1, emb_dim), jnp.float32),
        "w1": s * jax.random.normal(ks[6], (emb_dim, hidden), jnp.float32),
        "fb1": 0.05 * jax.random.normal(ks[7], (1, hidden), jnp.float32),
        "w2": s * jax.random.normal(ks[8], (hidden, emb_dim), jnp.float32),
        "fb2": 0.05 * jax.random.normal(ks[9], (1, emb_dim), jnp.float32),
        "g2": 1.0 + 0.05 * jax.random.normal(ks[10], (1, emb_dim), jnp.float32),
        "b2": 0.05 * jax.random.normal(ks[11], (1, emb_dim), jnp.float32),
    }


if __name__ == "__main__":
    B, S, E, H = 2, 8, 32, 4   # batch, seq, emb_dim, n_head

    key = jax.random.PRNGKey(0)
    kx, kp = jax.random.split(key)
    x = jax.random.normal(kx, (B, S, E), jnp.float32)
    params = make_params(kp, E, H)

    ref = encoder_block_ref(x, params)

    # f32 matmul-operand path: tight check against the pure-JAX reference.
    out = jax.block_until_ready(encoder_block(x, params))
    assert out.shape == (B, S, E)
    assert jnp.allclose(out, ref, atol=1e-4, rtol=1e-4), "f32 kernel mismatch vs reference"

    # bf16 matmul-operand path (v6e/v7x MXU-native, f32 accumulation): loose check.
    out_bf16 = jax.block_until_ready(encoder_block(x, params, use_bf16_matmul=True))
    assert out_bf16.shape == (B, S, E)
    assert bool(jnp.all(jnp.isfinite(out_bf16)))
    assert float(jnp.max(jnp.abs(out_bf16 - ref))) < 0.25, "bf16 kernel diverged from reference"

    print("KERNEL_OK")
</pallas_src>

<mosaic_0001>
module attributes {stable_mosaic.version = 11 : i64} {
  func.func @encoder_block_kernel(%arg0: i32, %arg1: memref<2x8x32xf32, #tpu.memory_space<vmem>>, %arg2: memref<32x32xf32, #tpu.memory_space<vmem>>, %arg3: memref<32x32xf32, #tpu.memory_space<vmem>>, %arg4: memref<32x32xf32, #tpu.memory_space<vmem>>, %arg5: memref<32x32xf32, #tpu.memory_space<vmem>>, %arg6: memref<1x32xf32, #tpu.memory_space<vmem>>, %arg7: memref<1x32xf32, #tpu.memory_space<vmem>>, %arg8: memref<32x128xf32, #tpu.memory_space<vmem>>, %arg9: memref<1x128xf32, #tpu.memory_space<vmem>>, %arg10: memref<128x32xf32, #tpu.memory_space<vmem>>, %arg11: memref<1x32xf32, #tpu.memory_space<vmem>>, %arg12: memref<1x32xf32, #tpu.memory_space<vmem>>, %arg13: memref<1x32xf32, #tpu.memory_space<vmem>>, %arg14: memref<2x8x32xf32, #tpu.memory_space<vmem>>) attributes {dimension_semantics = [#tpu.dimension_semantics<parallel>], iteration_bounds = array<i64: 1>, scalar_prefetch = 0 : i64, scratch_operands = 0 : i64, tpu.core_type = #tpu.core_type<tc>, window_params = [{transform_indices = @transform_0, window_bounds = array<i64: 2, 8, 32>}, {pipeline_mode = #tpu.pipeline_mode<synchronous>, transform_indices = @transform_1, window_bounds = array<i64: 32, 32>}, {pipeline_mode = #tpu.pipeline_mode<synchronous>, transform_indices = @transform_2, window_bounds = array<i64: 32, 32>}, {pipeline_mode = #tpu.pipeline_mode<synchronous>, transform_indices = @transform_3, window_bounds = array<i64: 32, 32>}, {pipeline_mode = #tpu.pipeline_mode<synchronous>, transform_indices = @transform_4, window_bounds = array<i64: 32, 32>}, {pipeline_mode = #tpu.pipeline_mode<synchronous>, transform_indices = @transform_5, window_bounds = array<i64: 1, 32>}, {pipeline_mode = #tpu.pipeline_mode<synchronous>, transform_indices = @transform_6, window_bounds = array<i64: 1, 32>}, {pipeline_mode = #tpu.pipeline_mode<synchronous>, transform_indices = @transform_7, window_bounds = array<i64: 32, 128>}, {pipeline_mode = #tpu.pipeline_mode<synchronous>, transform_indices = @transform_8, window_bounds = array<i64: 1, 128>}, {pipeline_mode = #tpu.pipeline_mode<synchronous>, transform_indices = @transform_9, window_bounds = array<i64: 128, 32>}, {pipeline_mode = #tpu.pipeline_mode<synchronous>, transform_indices = @transform_10, window_bounds = array<i64: 1, 32>}, {pipeline_mode = #tpu.pipeline_mode<synchronous>, transform_indices = @transform_11, window_bounds = array<i64: 1, 32>}, {pipeline_mode = #tpu.pipeline_mode<synchronous>, transform_indices = @transform_12, window_bounds = array<i64: 1, 32>}, {transform_indices = @transform_13, window_bounds = array<i64: 2, 8, 32>}]} {
    %c0 = arith.constant 0 : index
    %c0_0 = arith.constant 0 : index
    %c0_1 = arith.constant 0 : index
    %0 = vector.load %arg1[%c0, %c0_0, %c0_1] : memref<2x8x32xf32, #tpu.memory_space<vmem>>, vector<2x8x32xf32>
    %1 = vector.shape_cast %0 : vector<2x8x32xf32> to vector<16x32xf32>
    %c0_2 = arith.constant 0 : index
    %c0_3 = arith.constant 0 : index
    %2 = vector.load %arg2[%c0_2, %c0_3] : memref<32x32xf32, #tpu.memory_space<vmem>>, vector<32x32xf32>
    %cst = arith.constant dense<0.000000e+00> : vector<16x32xf32>
    %3 = tpu.matmul %1, %2, %cst {dimension_numbers = #tpu.dot_dimension_numbers<[1], [0], [0], [1], [0, 0, 1, 1], [], []>} : vector<16x32xf32>, vector<32x32xf32>, vector<16x32xf32> -> vector<16x32xf32>
    %c0_4 = arith.constant 0 : index
    %c0_5 = arith.constant 0 : index
    %4 = vector.load %arg3[%c0_4, %c0_5] : memref<32x32xf32, #tpu.memory_space<vmem>>, vector<32x32xf32>
    %cst_6 = arith.constant dense<0.000000e+00> : vector<16x32xf32>
    %5 = tpu.matmul %1, %4, %cst_6 {dimension_numbers = #tpu.dot_dimension_numbers<[1], [0], [0], [1], [0, 0, 1, 1], [], []>} : vector<16x32xf32>, vector<32x32xf32>, vector<16x32xf32> -> vector<16x32xf32>
    %c0_7 = arith.constant 0 : index
    %c0_8 = arith.constant 0 : index
    %6 = vector.load %arg4[%c0_7, %c0_8] : memref<32x32xf32, #tpu.memory_space<vmem>>, vector<32x32xf32>
    %cst_9 = arith.constant dense<0.000000e+00> : vector<16x32xf32>
    %7 = tpu.matmul %1, %6, %cst_9 {dimension_numbers = #tpu.dot_dimension_numbers<[1], [0], [0], [1], [0, 0, 1, 1], [], []>} : vector<16x32xf32>, vector<32x32xf32>, vector<16x32xf32> -> vector<16x32xf32>
    %8 = vector.shape_cast %3 : vector<16x32xf32> to vector<2x8x32xf32>
    %9 = vector.shape_cast %5 : vector<16x32xf32> to vector<2x8x32xf32>
    %10 = vector.shape_cast %7 : vector<16x32xf32> to vector<2x8x32xf32>
    %cst_10 = arith.constant 0.000000e+00 : f32
    %11 = vector.broadcast %cst_10 : f32 to vector<16x32xf32>
    %12 = vector.extract_strided_slice %8 {offsets = [0, 0, 0], sizes = [2, 8, 8], strides = [1, 1, 1]} : vector<2x8x32xf32> to vector<2x8x8xf32>
    %13 = vector.extract_strided_slice %9 {offsets = [0, 0, 0], sizes = [2, 8, 8], strides = [1, 1, 1]} : vector<2x8x32xf32> to vector<2x8x8xf32>
    %14 = vector.extract_strided_slice %10 {offsets = [0, 0, 0], sizes = [2, 8, 8], strides = [1, 1, 1]} : vector<2x8x32xf32> to vector<2x8x8xf32>
    "tpu.trace_start"() <{level = 10 : i32, message = "bqd,bkd->bqk"}> : () -> ()
    %cst_11 = arith.constant dense<0.000000e+00> : vector<2x8x8xf32>
    %15 = tpu.matmul %12, %13, %cst_11 {dimension_numbers = #tpu.dot_dimension_numbers<[2], [2], [1], [1], [0, 0, 0, 1, 1, 1], [0], [0]>} : vector<2x8x8xf32>, vector<2x8x8xf32>, vector<2x8x8xf32> -> vector<2x8x8xf32>
    "tpu.trace_stop"() : () -> ()
    %cst_12 = arith.constant dense<0xFF800000> : vector<2x8xf32>
    %16 = vector.multi_reduction <maximumf>, %15, %cst_12 [2] : vector<2x8x8xf32> to vector<2x8xf32>
    %17 = vector.shape_cast %16 : vector<2x8xf32> to vector<2x8x1xf32>
    %18 = vector.broadcast %17 : vector<2x8x1xf32> to vector<2x8x8xf32>
    %19 = arith.subf %15, %18 : vector<2x8x8xf32>
    %20 = math.exp %19 : vector<2x8x8xf32>
    %cst_13 = arith.constant dense<0.000000e+00> : vector<2x8xf32>
    %21 = vector.multi_reduction <add>, %20, %cst_13 [2] : vector<2x8x8xf32> to vector<2x8xf32>
    %22 = vector.shape_cast %21 : vector<2x8xf32> to vector<2x8x1xf32>
    %23 = tpu.reciprocal %22 : vector<2x8x1xf32> -> vector<2x8x1xf32>
    %24 = vector.broadcast %23 : vector<2x8x1xf32> to vector<2x8x8xf32>
    %25 = arith.mulf %20, %24 : vector<2x8x8xf32>
    "tpu.trace_start"() <{level = 10 : i32, message = "bqk,bkd->bqd"}> : () -> ()
    %cst_14 = arith.constant dense<0.000000e+00> : vector<2x8x8xf32>
    %26 = tpu.matmul %25, %14, %cst_14 {dimension_numbers = #tpu.dot_dimension_numbers<[2], [1], [1], [2], [0, 0, 0, 1, 1, 2], [0], [0]>} : vector<2x8x8xf32>, vector<2x8x8xf32>, vector<2x8x8xf32> -> vector<2x8x8xf32>
    "tpu.trace_stop"() : () -> ()
    %27 = vector.shape_cast %26 : vector<2x8x8xf32> to vector<16x8xf32>
    %c0_15 = arith.constant 0 : index
    %c0_16 = arith.constant 0 : index
    %28 = vector.load %arg5[%c0_15, %c0_16] : memref<32x32xf32, #tpu.memory_space<vmem>>, vector<8x32xf32>
    %cst_17 = arith.constant dense<0.000000e+00> : vector<16x32xf32>
    %29 = tpu.matmul %27, %28, %cst_17 {dimension_numbers = #tpu.dot_dimension_numbers<[1], [0], [0], [1], [0, 0, 1, 1], [], []>} : vector<16x8xf32>, vector<8x32xf32>, vector<16x32xf32> -> vector<16x32xf32>
    %30 = arith.addf %11, %29 : vector<16x32xf32>
    %31 = vector.extract_strided_slice %8 {offsets = [0, 0, 8], sizes = [2, 8, 8], strides = [1, 1, 1]} : vector<2x8x32xf32> to vector<2x8x8xf32>
    %32 = vector.extract_strided_slice %9 {offsets = [0, 0, 8], sizes = [2, 8, 8], strides = [1, 1, 1]} : vector<2x8x32xf32> to vector<2x8x8xf32>
    %33 = vector.extract_strided_slice %10 {offsets = [0, 0, 8], sizes = [2, 8, 8], strides = [1, 1, 1]} : vector<2x8x32xf32> to vector<2x8x8xf32>
    "tpu.trace_start"() <{level = 10 : i32, message = "bqd,bkd->bqk"}> : () -> ()
    %cst_18 = arith.constant dense<0.000000e+00> : vector<2x8x8xf32>
    %34 = tpu.matmul %31, %32, %cst_18 {dimension_numbers = #tpu.dot_dimension_numbers<[2], [2], [1], [1], [0, 0, 0, 1, 1, 1], [0], [0]>} : vector<2x8x8xf32>, vector<2x8x8xf32>, vector<2x8x8xf32> -> vector<2x8x8xf32>
    "tpu.trace_stop"() : () -> ()
    %cst_19 = arith.constant dense<0xFF800000> : vector<2x8xf32>
    %35 = vector.multi_reduction <maximumf>, %34, %cst_19 [2] : vector<2x8x8xf32> to vector<2x8xf32>
    %36 = vector.shape_cast %35 : vector<2x8xf32> to vector<2x8x1xf32>
    %37 = vector.broadcast %36 : vector<2x8x1xf32> to vector<2x8x8xf32>
    %38 = arith.subf %34, %37 : vector<2x8x8xf32>
    %39 = math.exp %38 : vector<2x8x8xf32>
    %cst_20 = arith.constant dense<0.000000e+00> : vector<2x8xf32>
    %40 = vector.multi_reduction <add>, %39, %cst_20 [2] : vector<2x8x8xf32> to vector<2x8xf32>
    %41 = vector.shape_cast %40 : vector<2x8xf32> to vector<2x8x1xf32>
    %42 = tpu.reciprocal %41 : vector<2x8x1xf32> -> vector<2x8x1xf32>
    %43 = vector.broadcast %42 : vector<2x8x1xf32> to vector<2x8x8xf32>
    %44 = arith.mulf %39, %43 : vector<2x8x8xf32>
    "tpu.trace_start"() <{level = 10 : i32, message = "bqk,bkd->bqd"}> : () -> ()
    %cst_21 = arith.constant dense<0.000000e+00> : vector<2x8x8xf32>
    %45 = tpu.matmul %44, %33, %cst_21 {dimension_numbers = #tpu.dot_dimension_numbers<[2], [1], [1], [2], [0, 0, 0, 1, 1, 2], [0], [0]>} : vector<2x8x8xf32>, vector<2x8x8xf32>, vector<2x8x8xf32> -> vector<2x8x8xf32>
    "tpu.trace_stop"() : () -> ()
    %46 = vector.shape_cast %45 : vector<2x8x8xf32> to vector<16x8xf32>
    %c8 = arith.constant 8 : index
    %c0_22 = arith.constant 0 : index
    %47 = vector.load %arg5[%c8, %c0_22] : memref<32x32xf32, #tpu.memory_space<vmem>>, vector<8x32xf32>
    %cst_23 = arith.constant dense<0.000000e+00> : vector<16x32xf32>
    %48 = tpu.matmul %46, %47, %cst_23 {dimension_numbers = #tpu.dot_dimension_numbers<[1], [0], [0], [1], [0, 0, 1, 1], [], []>} : vector<16x8xf32>, vector<8x32xf32>, vector<16x32xf32> -> vector<16x32xf32>
    %49 = arith.addf %30, %48 : vector<16x32xf32>
    %50 = vector.extract_strided_slice %8 {offsets = [0, 0, 16], sizes = [2, 8, 8], strides = [1, 1, 1]} : vector<2x8x32xf32> to vector<2x8x8xf32>
    %51 = vector.extract_strided_slice %9 {offsets = [0, 0, 16], sizes = [2, 8, 8], strides = [1, 1, 1]} : vector<2x8x32xf32> to vector<2x8x8xf32>
    %52 = vector.extract_strided_slice %10 {offsets = [0, 0, 16], sizes = [2, 8, 8], strides = [1, 1, 1]} : vector<2x8x32xf32> to vector<2x8x8xf32>
    "tpu.trace_start"() <{level = 10 : i32, message = "bqd,bkd->bqk"}> : () -> ()
    %cst_24 = arith.constant dense<0.000000e+00> : vector<2x8x8xf32>
    %53 = tpu.matmul %50, %51, %cst_24 {dimension_numbers = #tpu.dot_dimension_numbers<[2], [2], [1], [1], [0, 0, 0, 1, 1, 1], [0], [0]>} : vector<2x8x8xf32>, vector<2x8x8xf32>, vector<2x8x8xf32> -> vector<2x8x8xf32>
    "tpu.trace_stop"() : () -> ()
    %cst_25 = arith.constant dense<0xFF800000> : vector<2x8xf32>
    %54 = vector.multi_reduction <maximumf>, %53, %cst_25 [2] : vector<2x8x8xf32> to vector<2x8xf32>
    %55 = vector.shape_cast %54 : vector<2x8xf32> to vector<2x8x1xf32>
    %56 = vector.broadcast %55 : vector<2x8x1xf32> to vector<2x8x8xf32>
    %57 = arith.subf %53, %56 : vector<2x8x8xf32>
    %58 = math.exp %57 : vector<2x8x8xf32>
    %cst_26 = arith.constant dense<0.000000e+00> : vector<2x8xf32>
    %59 = vector.multi_reduction <add>, %58, %cst_26 [2] : vector<2x8x8xf32> to vector<2x8xf32>
    %60 = vector.shape_cast %59 : vector<2x8xf32> to vector<2x8x1xf32>
    %61 = tpu.reciprocal %60 : vector<2x8x1xf32> -> vector<2x8x1xf32>
    %62 = vector.broadcast %61 : vector<2x8x1xf32> to vector<2x8x8xf32>
    %63 = arith.mulf %58, %62 : vector<2x8x8xf32>
    "tpu.trace_start"() <{level = 10 : i32, message = "bqk,bkd->bqd"}> : () -> ()
    %cst_27 = arith.constant dense<0.000000e+00> : vector<2x8x8xf32>
    %64 = tpu.matmul %63, %52, %cst_27 {dimension_numbers = #tpu.dot_dimension_numbers<[2], [1], [1], [2], [0, 0, 0, 1, 1, 2], [0], [0]>} : vector<2x8x8xf32>, vector<2x8x8xf32>, vector<2x8x8xf32> -> vector<2x8x8xf32>
    "tpu.trace_stop"() : () -> ()
    %65 = vector.shape_cast %64 : vector<2x8x8xf32> to vector<16x8xf32>
    %c16 = arith.constant 16 : index
    %c0_28 = arith.constant 0 : index
    %66 = vector.load %arg5[%c16, %c0_28] : memref<32x32xf32, #tpu.memory_space<vmem>>, vector<8x32xf32>
    %cst_29 = arith.constant dense<0.000000e+00> : vector<16x32xf32>
    %67 = tpu.matmul %65, %66, %cst_29 {dimension_numbers = #tpu.dot_dimension_numbers<[1], [0], [0], [1], [0, 0, 1, 1], [], []>} : vector<16x8xf32>, vector<8x32xf32>, vector<16x32xf32> -> vector<16x32xf32>
    %68 = arith.addf %49, %67 : vector<16x32xf32>
    %69 = vector.extract_strided_slice %8 {offsets = [0, 0, 24], sizes = [2, 8, 8], strides = [1, 1, 1]} : vector<2x8x32xf32> to vector<2x8x8xf32>
    %70 = vector.extract_strided_slice %9 {offsets = [0, 0, 24], sizes = [2, 8, 8], strides = [1, 1, 1]} : vector<2x8x32xf32> to vector<2x8x8xf32>
    %71 = vector.extract_strided_slice %10 {offsets = [0, 0, 24], sizes = [2, 8, 8], strides = [1, 1, 1]} : vector<2x8x32xf32> to vector<2x8x8xf32>
    "tpu.trace_start"() <{level = 10 : i32, message = "bqd,bkd->bqk"}> : () -> ()
    %cst_30 = arith.constant dense<0.000000e+00> : vector<2x8x8xf32>
    %72 = tpu.matmul %69, %70, %cst_30 {dimension_numbers = #tpu.dot_dimension_numbers<[2], [2], [1], [1], [0, 0, 0, 1, 1, 1], [0], [0]>} : vector<2x8x8xf32>, vector<2x8x8xf32>, vector<2x8x8xf32> -> vector<2x8x8xf32>
    "tpu.trace_stop"() : () -> ()
    %cst_31 = arith.constant dense<0xFF800000> : vector<2x8xf32>
    %73 = vector.multi_reduction <maximumf>, %72, %cst_31 [2] : vector<2x8x8xf32> to vector<2x8xf32>
    %74 = vector.shape_cast %73 : vector<2x8xf32> to vector<2x8x1xf32>
    %75 = vector.broadcast %74 : vector<2x8x1xf32> to vector<2x8x8xf32>
    %76 = arith.subf %72, %75 : vector<2x8x8xf32>
    %77 = math.exp %76 : vector<2x8x8xf32>
    %cst_32 = arith.constant dense<0.000000e+00> : vector<2x8xf32>
    %78 = vector.multi_reduction <add>, %77, %cst_32 [2] : vector<2x8x8xf32> to vector<2x8xf32>
    %79 = vector.shape_cast %78 : vector<2x8xf32> to vector<2x8x1xf32>
    %80 = tpu.reciprocal %79 : vector<2x8x1xf32> -> vector<2x8x1xf32>
    %81 = vector.broadcast %80 : vector<2x8x1xf32> to vector<2x8x8xf32>
    %82 = arith.mulf %77, %81 : vector<2x8x8xf32>
    "tpu.trace_start"() <{level = 10 : i32, message = "bqk,bkd->bqd"}> : () -> ()
    %cst_33 = arith.constant dense<0.000000e+00> : vector<2x8x8xf32>
    %83 = tpu.matmul %82, %71, %cst_33 {dimension_numbers = #tpu.dot_dimension_numbers<[2], [1], [1], [2], [0, 0, 0, 1, 1, 2], [0], [0]>} : vector<2x8x8xf32>, vector<2x8x8xf32>, vector<2x8x8xf32> -> vector<2x8x8xf32>
    "tpu.trace_stop"() : () -> ()
    %84 = vector.shape_cast %83 : vector<2x8x8xf32> to vector<16x8xf32>
    %c24 = arith.constant 24 : index
    %c0_34 = arith.constant 0 : index
    %85 = vector.load %arg5[%c24, %c0_34] : memref<32x32xf32, #tpu.memory_space<vmem>>, vector<8x32xf32>
    %cst_35 = arith.constant dense<0.000000e+00> : vector<16x32xf32>
    %86 = tpu.matmul %84, %85, %cst_35 {dimension_numbers = #tpu.dot_dimension_numbers<[1], [0], [0], [1], [0, 0, 1, 1], [], []>} : vector<16x8xf32>, vector<8x32xf32>, vector<16x32xf32> -> vector<16x32xf32>
    %87 = arith.addf %68, %86 : vector<16x32xf32>
    %88 = arith.addf %87, %1 : vector<16x32xf32>
    %c0_36 = arith.constant 0 : index
    %c0_37 = arith.constant 0 : index
    %89 = vector.load %arg6[%c0_36, %c0_37] : memref<1x32xf32, #tpu.memory_space<vmem>>, vector<1x32xf32>
    %c0_38 = arith.constant 0 : index
    %c0_39 = arith.constant 0 : index
    %90 = vector.load %arg7[%c0_38, %c0_39] : memref<1x32xf32, #tpu.memory_space<vmem>>, vector<1x32xf32>
    %cst_40 = arith.constant dense<0.000000e+00> : vector<16xf32>
    %91 = vector.multi_reduction <add>, %88, %cst_40 [1] : vector<16x32xf32> to vector<16xf32>
    %92 = vector.shape_cast %91 : vector<16xf32> to vector<16x1xf32>
    %cst_41 = arith.constant 3.200000e+01 : f32
    %93 = vector.broadcast %cst_41 : f32 to vector<16x1xf32>
    %94 = arith.divf %92, %93 : vector<16x1xf32>
    %95 = vector.broadcast %94 : vector<16x1xf32> to vector<16x32xf32>
    %96 = arith.subf %88, %95 : vector<16x32xf32>
    %97 = arith.mulf %96, %96 : vector<16x32xf32>
    %cst_42 = arith.constant dense<0.000000e+00> : vector<16xf32>
    %98 = vector.multi_reduction <add>, %97, %cst_42 [1] : vector<16x32xf32> to vector<16xf32>
    %99 = vector.shape_cast %98 : vector<16xf32> to vector<16x1xf32>
    %cst_43 = arith.constant 3.200000e+01 : f32
    %100 = vector.broadcast %cst_43 : f32 to vector<16x1xf32>
    %101 = arith.divf %99, %100 : vector<16x1xf32>
    %102 = vector.broadcast %94 : vector<16x1xf32> to vector<16x32xf32>
    %103 = arith.subf %88, %102 : vector<16x32xf32>
    %cst_44 = arith.constant 9.99999974E-6 : f32
    %104 = vector.broadcast %cst_44 : f32 to vector<16x1xf32>
    %105 = arith.addf %101, %104 : vector<16x1xf32>
    %106 = math.rsqrt %105 : vector<16x1xf32>
    %107 = vector.broadcast %106 : vector<16x1xf32> to vector<16x32xf32>
    %108 = arith.mulf %103, %107 : vector<16x32xf32>
    %109 = vector.broadcast %89 : vector<1x32xf32> to vector<16x32xf32>
    %110 = arith.mulf %108, %109 : vector<16x32xf32>
    %111 = vector.broadcast %90 : vector<1x32xf32> to vector<16x32xf32>
    %112 = arith.addf %110, %111 : vector<16x32xf32>
    %c0_45 = arith.constant 0 : index
    %c0_46 = arith.constant 0 : index
    %113 = vector.load %arg8[%c0_45, %c0_46] : memref<32x128xf32, #tpu.memory_space<vmem>>, vector<32x128xf32>
    %cst_47 = arith.constant dense<0.000000e+00> : vector<16x128xf32>
    %114 = tpu.matmul %112, %113, %cst_47 {dimension_numbers = #tpu.dot_dimension_numbers<[1], [0], [0], [1], [0, 0, 1, 1], [], []>} : vector<16x32xf32>, vector<32x128xf32>, vector<16x128xf32> -> vector<16x128xf32>
    %c0_48 = arith.constant 0 : index
    %c0_49 = arith.constant 0 : index
    %115 = vector.load %arg9[%c0_48, %c0_49] : memref<1x128xf32, #tpu.memory_space<vmem>>, vector<1x128xf32>
    %116 = vector.broadcast %115 : vector<1x128xf32> to vector<16x128xf32>
    %117 = arith.addf %114, %116 : vector<16x128xf32>
    %cst_50 = arith.constant 0.000000e+00 : f32
    %118 = vector.broadcast %cst_50 : f32 to vector<16x128xf32>
    %119 = arith.maximumf %117, %118 : vector<16x128xf32>
    %c0_51 = arith.constant 0 : index
    %c0_52 = arith.constant 0 : index
    %120 = vector.load %arg10[%c0_51, %c0_52] : memref<128x32xf32, #tpu.memory_space<vmem>>, vector<128x32xf32>
    %cst_53 = arith.constant dense<0.000000e+00> : vector<16x32xf32>
    %121 = tpu.matmul %119, %120, %cst_53 {dimension_numbers = #tpu.dot_dimension_numbers<[1], [0], [0], [1], [0, 0, 1, 1], [], []>} : vector<16x128xf32>, vector<128x32xf32>, vector<16x32xf32> -> vector<16x32xf32>
    %c0_54 = arith.constant 0 : index
    %c0_55 = arith.constant 0 : index
    %122 = vector.load %arg11[%c0_54, %c0_55] : memref<1x32xf32, #tpu.memory_space<vmem>>, vector<1x32xf32>
    %123 = vector.broadcast %122 : vector<1x32xf32> to vector<16x32xf32>
    %124 = arith.addf %121, %123 : vector<16x32xf32>
    %125 = arith.addf %124, %112 : vector<16x32xf32>
    %c0_56 = arith.constant 0 : index
    %c0_57 = arith.constant 0 : index
    %126 = vector.load %arg12[%c0_56, %c0_57] : memref<1x32xf32, #tpu.memory_space<vmem>>, vector<1x32xf32>
    %c0_58 = arith.constant 0 : index
    %c0_59 = arith.constant 0 : index
    %127 = vector.load %arg13[%c0_58, %c0_59] : memref<1x32xf32, #tpu.memory_space<vmem>>, vector<1x32xf32>
    %cst_60 = arith.constant dense<0.000000e+00> : vector<16xf32>
    %128 = vector.multi_reduction <add>, %125, %cst_60 [1] : vector<16x32xf32> to vector<16xf32>
    %129 = vector.shape_cast %128 : vector<16xf32> to vector<16x1xf32>
    %cst_61 = arith.constant 3.200000e+01 : f32
    %130 = vector.broadcast %cst_61 : f32 to vector<16x1xf32>
    %131 = arith.divf %129, %130 : vector<16x1xf32>
    %132 = vector.broadcast %131 : vector<16x1xf32> to vector<16x32xf32>
    %133 = arith.subf %125, %132 : vector<16x32xf32>
    %134 = arith.mulf %133, %133 : vector<16x32xf32>
    %cst_62 = arith.constant dense<0.000000e+00> : vector<16xf32>
    %135 = vector.multi_reduction <add>, %134, %cst_62 [1] : vector<16x32xf32> to vector<16xf32>
    %136 = vector.shape_cast %135 : vector<16xf32> to vector<16x1xf32>
    %cst_63 = arith.constant 3.200000e+01 : f32
    %137 = vector.broadcast %cst_63 : f32 to vector<16x1xf32>
    %138 = arith.divf %136, %137 : vector<16x1xf32>
    %139 = vector.broadcast %131 : vector<16x1xf32> to vector<16x32xf32>
    %140 = arith.subf %125, %139 : vector<16x32xf32>
    %cst_64 = arith.constant 9.99999974E-6 : f32
    %141 = vector.broadcast %cst_64 : f32 to vector<16x1xf32>
    %142 = arith.addf %138, %141 : vector<16x1xf32>
    %143 = math.rsqrt %142 : vector<16x1xf32>
    %144 = vector.broadcast %143 : vector<16x1xf32> to vector<16x32xf32>
    %145 = arith.mulf %140, %144 : vector<16x32xf32>
    %146 = vector.broadcast %126 : vector<1x32xf32> to vector<16x32xf32>
    %147 = arith.mulf %145, %146 : vector<16x32xf32>
    %148 = vector.broadcast %127 : vector<1x32xf32> to vector<16x32xf32>
    %149 = arith.addf %147, %148 : vector<16x32xf32>
    %150 = vector.shape_cast %149 : vector<16x32xf32> to vector<2x8x32xf32>
    %c0_65 = arith.constant 0 : index
    %c0_66 = arith.constant 0 : index
    %c0_67 = arith.constant 0 : index
    %151 = vector.load %arg14[%c0_65, %c0_66, %c0_67] : memref<2x8x32xf32, #tpu.memory_space<vmem>>, vector<2x8x32xf32>
    tpu.vector_store %arg14[%c0_65, %c0_66, %c0_67], %150 {strides = array<i32>} : memref<2x8x32xf32, #tpu.memory_space<vmem>>, vector<2x8x32xf32>,
    return
  }
  func.func @transform_0(%arg0: i32) -> (i32, i32, i32) {
    %c0_i32 = arith.constant 0 : i32
    %c0_i32_0 = arith.constant 0 : i32
    %c0_i32_1 = arith.constant 0 : i32
    return %arg0, %c0_i32, %c0_i32_0 : i32, i32, i32
  }
  func.func @transform_1(%arg0: i32) -> (i32, i32) {
    %c0_i32 = arith.constant 0 : i32
    %c0_i32_0 = arith.constant 0 : i32
    %c0_i32_1 = arith.constant 0 : i32
    return %c0_i32, %c0_i32_0 : i32, i32
  }
  func.func @transform_2(%arg0: i32) -> (i32, i32) {
    %c0_i32 = arith.constant 0 : i32
    %c0_i32_0 = arith.constant 0 : i32
    %c0_i32_1 = arith.constant 0 : i32
    return %c0_i32, %c0_i32_0 : i32, i32
  }
  func.func @transform_3(%arg0: i32) -> (i32, i32) {
    %c0_i32 = arith.constant 0 : i32
    %c0_i32_0 = arith.constant 0 : i32
    %c0_i32_1 = arith.constant 0 : i32
    return %c0_i32, %c0_i32_0 : i32, i32
  }
  func.func @transform_4(%arg0: i32) -> (i32, i32) {
    %c0_i32 = arith.constant 0 : i32
    %c0_i32_0 = arith.constant 0 : i32
    %c0_i32_1 = arith.constant 0 : i32
    return %c0_i32, %c0_i32_0 : i32, i32
  }
  func.func @transform_5(%arg0: i32) -> (i32, i32) {
    %c0_i32 = arith.constant 0 : i32
    %c0_i32_0 = arith.constant 0 : i32
    %c0_i32_1 = arith.constant 0 : i32
    return %c0_i32, %c0_i32_0 : i32, i32
  }
  func.func @transform_6(%arg0: i32) -> (i32, i32) {
    %c0_i32 = arith.constant 0 : i32
    %c0_i32_0 = arith.constant 0 : i32
    %c0_i32_1 = arith.constant 0 : i32
    return %c0_i32, %c0_i32_0 : i32, i32
  }
  func.func @transform_7(%arg0: i32) -> (i32, i32) {
    %c0_i32 = arith.constant 0 : i32
    %c0_i32_0 = arith.constant 0 : i32
    %c0_i32_1 = arith.constant 0 : i32
    return %c0_i32, %c0_i32_0 : i32, i32
  }
  func.func @transform_8(%arg0: i32) -> (i32, i32) {
    %c0_i32 = arith.constant 0 : i32
    %c0_i32_0 = arith.constant 0 : i32
    %c0_i32_1 = arith.constant 0 : i32
    return %c0_i32, %c0_i32_0 : i32, i32
  }
  func.func @transform_9(%arg0: i32) -> (i32, i32) {
    %c0_i32 = arith.constant 0 : i32
    %c0_i32_0 = arith.constant 0 : i32
    %c0_i32_1 = arith.constant 0 : i32
    return %c0_i32, %c0_i32_0 : i32, i32
  }
  func.func @transform_10(%arg0: i32) -> (i32, i32) {
    %c0_i32 = arith.constant 0 : i32
    %c0_i32_0 = arith.constant 0 : i32
    %c0_i32_1 = arith.constant 0 : i32
    return %c0_i32, %c0_i32_0 : i32, i32
  }
  func.func @transform_11(%arg0: i32) -> (i32, i32) {
    %c0_i32 = arith.constant 0 : i32
    %c0_i32_0 = arith.constant 0 : i32
    %c0_i32_1 = arith.constant 0 : i32
    return %c0_i32, %c0_i32_0 : i32, i32
  }
  func.func @transform_12(%arg0: i32) -> (i32, i32) {
    %c0_i32 = arith.constant 0 : i32
    %c0_i32_0 = arith.constant 0 : i32
    %c0_i32_1 = arith.constant 0 : i32
    return %c0_i32, %c0_i32_0 : i32, i32
  }
  func.func @transform_13(%arg0: i32) -> (i32, i32, i32) {
    %c0_i32 = arith.constant 0 : i32
    %c0_i32_0 = arith.constant 0 : i32
    %c0_i32_1 = arith.constant 0 : i32
    return %arg0, %c0_i32, %c0_i32_0 : i32, i32, i32
  }
}

</mosaic_0001>

<bundles_post_ra>
// kernel: tpu_custom_call.1
= control target key start
LH: loop header
LB: loop body
LE: loop exit
PB: predicated region body
PF: predicated region fallthrough
CT: control target
= control target key end

     0   :  { %18 = vsyncpa [#allocation3], 0  ;;  %s3206_s0 = inlined_call_operand.hbm [shape: f32[2,8,32], index: 0, kind: input, shape index: {}]   ;;  %s3207_s1 = inlined_call_operand.vmem [shape: f32[32,32], index: 1, kind: input, shape index: {}]   ;;  %s3208_s2 = inlined_call_operand.vmem [shape: f32[32,32], index: 2, kind: input, shape index: {}]   ;;  %s3209_s3 = inlined_call_operand.vmem [shape: f32[32,32], index: 3, kind: input, shape index: {}]   ;;  %s3210_s4 = inlined_call_operand.vmem [shape: f32[32,32], index: 4, kind: input, shape index: {}]   ;;  %s3211_s5 = inlined_call_operand.vmem [shape: f32[1,32], index: 5, kind: input, shape index: {}]   ;;  %s3212_s6 = inlined_call_operand.vmem [shape: f32[1,32], index: 6, kind: input, shape index: {}]   ;;  %s3213_s7 = inlined_call_operand.vmem [shape: f32[32,128], index: 7, kind: input, shape index: {}]   ;;  %s3214_s8 = inlined_call_operand.hbm [shape: f32[1,128], index: 8, kind: input, shape index: {}]   ;;  %s3215_s9 = inlined_call_operand.vmem [shape: f32[128,32], index: 9, kind: input, shape index: {}]   ;;  %s3216_s10 = inlined_call_operand.vmem [shape: f32[1,32], index: 10, kind: input, shape index: {}]   ;;  %s3217_s11 = inlined_call_operand.vmem [shape: f32[1,32], index: 11, kind: input, shape index: {}]   ;;  %s3218_s12 = inlined_call_operand.vmem [shape: f32[1,32], index: 12, kind: input, shape index: {}]   ;;  %s3219_s13 = inlined_call_operand.hbm [shape: f32[2,8,32], index: 13, kind: output, shape index: {}]  }
   0x1   :  { %19 = vsyncpa [#allocation6], 0 }
   0x2   :  { %20 = vsyncpa [#allocation4], 0  ;;  %s2770_s25 = smov [#allocation2]   ;;  %s2698_s29 = scalar_lea.hbm %s3206_s0, 256 }
   0x3   :  { %s26_s26 = sshll.u32 %s2770_s25, 4  ;;  %p2699_p0 = scmp.ne.s32.totalorder %s3206_s0, %s2698_s29  ;;  %s27_s26 = int_to_ptr.vmem [resolvable:$true] %s26_s26 }
   0x4   :  { %p2702_p1 = scmp.lt.u32.totalorder %s2698_s29, %s3206_s0 }
   0x6   :  { %p2704_p2 = pnand %p2702_p1, %p2699_p0 }
   0x8   :  { %2707 = shalt.err (!%p2704_p2)
}
   0x9   :  { %s2708_s17 = scalar_lea.vmem %s27_s26, 256  ;;  %p2713_p4 = scmp.lt.s32.totalorder %s27_s26, %s27_s26 }
   0xa   :  { %p2709_p3 = scmp.ne.s32.totalorder %s27_s26, %s2708_s17  ;;  %p2714_p5 = scmp.lt.s32.totalorder %s2708_s17, %s2708_s17 }
   0xc   :  { %p2715_p6 = por %p2714_p5, %p2713_p4 }
   0xe   :  { %p2716_p7 = pnand %p2715_p6, %p2709_p3 }
  0x10   :  { %2719 = shalt.err (!%p2716_p7)
}
  0x11   :  { %s2771_s18 = smov 128   ;;  %s2772_s19 = smov 8  }
  0x12   :  { %32 = dma.hbm_to_vmem [thread:$0]  %s3206_s0, 256, %s27_s26, [#allocation3], %s2771_s18, %s2771_s18, %s2772_s19  }
  0x13   :  { %s2773_s22 = smov [#allocation5]   ;;  %s2720_s27 = scalar_lea.hbm %s3214_s8, 16 }
  0x14   :  { %s53_s23 = sshll.u32 %s2773_s22, 4  ;;  %p2721_p8 = scmp.ne.s32.totalorder %s3214_s8, %s2720_s27  ;;  %s54_s23 = int_to_ptr.vmem [resolvable:$true] %s53_s23 }
  0x15   :  { %p2724_p9 = scmp.lt.u32.totalorder %s2720_s27, %s3214_s8 }
  0x17   :  { %p2726_p10 = pnand %p2724_p9, %p2721_p8 }
  0x19   :  { %2729 = shalt.err (!%p2726_p10)
}
  0x1a   :  { %s2730_s15 = scalar_lea.vmem %s54_s23, 16  ;;  %s2734_s0 = scalar_lea.vmem %s54_s23, 32 }
  0x1b   :  { %p2731_p11 = scmp.ne.s32.totalorder %s54_s23, %s2730_s15  ;;  %p2735_p12 = scmp.lt.s32.totalorder %s54_s23, %s54_s23 }
  0x1c   :  { %p2736_p13 = scmp.lt.s32.totalorder %s2734_s0, %s2730_s15 }
  0x1e   :  { %p2737_p0 = por %p2736_p13, %p2735_p12 }
  0x20   :  { %p2738_p1 = pnand %p2737_p0, %p2731_p11 }
  0x22   :  { %2741 = shalt.err (!%p2738_p1)
}
  0x23   :  { %56 = dma.hbm_to_vmem [thread:$0]  %s3214_s8, 16, %s54_s23, [#allocation6]  }
  0x24   :  { %2764 = dma.done.wait [#allocation3], 256  }
  0x25   :  { %2765 = vsyncadd [#allocation3], 4294967040 }
  0x26   :  { %2766 = dma.done.wait [#allocation6], 16  }
  0x27   :  { %2767 = vsyncadd [#allocation6], 4294967280  ;;  %vm77_vm0 = vcmask 261120   ;;  %v73_v0 = vld [vmem:[%s3207_s1] sm:$0xff]  ;;  %v74_v1 = vld [vmem:[%s3207_s1 + $0x8] sm:$0xff]  ;;  %v2774_v20 = vmov 0.0  }
  0x28   :  { %v75_v2 = vld [vmem:[%s3207_s1 + $0x10] sm:$0xff]  ;;  %v2578_v3 = vpack.c.bf16 %v74_v1, %v73_v0  ;;  %v76_v4 = vld [vmem:[%s3207_s1 + $0x18] sm:$0xff]  ;;  %v2889_v5 = vld [vmem:[#allocation2] sm:$0xff]  ;;  %2442 = vmatprep.subr.mxu0 %v2774_v20  ;;  %vm2775_vm1 = vmmov 0   ;;  %vm317_vm2 = vcmask 64512   ;;  %s2777_s25 = smov 112  }
  0x29   :  { %v2582_v6 = vpack.c.bf16 %v76_v4, %v75_v2  ;;  %2407 = vmatprep.mubr.msk.f32.mxu1 %vm77_vm0, %v2889_v5  ;;  %v159_v7 = vld [vmem:[%s3208_s2] sm:$0xff]  ;;  %v160_v8 = vld [vmem:[%s3208_s2 + $0x8] sm:$0xff]  ;;  %v161_v10 = vld [vmem:[%s3208_s2 + $0x10] sm:$0xff]  ;;  %2444 = vmatprep.mubr.msk.f32.mxu0 %vm2775_vm1, %v2774_v20  ;;  %s2778_s29 = smov 104   ;;  %s2779_s26 = smov [#allocation7]  }
  0x2a   :  { %2579 = vmatprep.subr.bf16.mxu1 %v2578_v3  ;;  %v2586_v9 = vpack.c.bf16 %v160_v8, %v159_v7  ;;  %v162_v11 = vld [vmem:[%s3208_s2 + $0x18] sm:$0xff]  ;;  %v2905_v12 = vld [vmem:[#allocation2 + $0x8] sm:$0xff]  ;;  %v238_v14 = vld [vmem:[%s3209_s3] sm:$0xff]  ;;  %s2254_s16 = sshll.u32 %s2779_s26, 4  ;;  %s2255_s16 = int_to_ptr.vmem [resolvable:$true] %s2254_s16 }
  0x2b   :  { %2581 = vmatpush3.bf16.msra.mxu1 %v2578_v3  ;;  %v2590_v13 = vpack.c.bf16 %v162_v11, %v161_v10  ;;  %v239_v15 = vld [vmem:[%s3209_s3 + $0x8] sm:$0xff]  ;;  %v240_v17 = vld [vmem:[%s3209_s3 + $0x10] sm:$0xff]  ;;  %v241_v18 = vld [vmem:[%s3209_s3 + $0x18] sm:$0xff]  ;;  %s2776_s3 = smov 120   ;;  %s2742_s17 = scalar_lea.vmem %s2255_s16, 256 }
  0x2c   :  { %2583 = vmatprep.subr.bf16.mxu1 %v2582_v6  ;;  %v2594_v16 = vpack.c.bf16 %v239_v15, %v238_v14  ;;  %v2598_v19 = vpack.c.bf16 %v241_v18, %v240_v17  ;;  %p2743_p2 = scmp.ne.s32.totalorder %s2255_s16, %s2742_s17  ;;  %p2747_p3 = scmp.lt.s32.totalorder %s2255_s16, %s2255_s16 }
  0x2d   :  { %p2748_p4 = scmp.lt.s32.totalorder %s2742_s17, %s2742_s17 }
  0x2f   :  { %2585 = vmatpush3.bf16.msra.mxu1 %v2582_v6  ;;  %p2749_p5 = por %p2748_p4, %p2747_p3 }
  0x30   :  { %2587 = vmatprep.subr.bf16.mxu1 %v2586_v9 }
  0x31   :  { %p2750_p6 = pnand %p2749_p5, %p2743_p2 }
  0x32   :  { %2408 = vmatmul.mubr.msk.f32.vlgmr.msra.gmra.mrb[0].mxu1 %vm77_vm0, %v2905_v12 }
  0x33   :  { %2589 = vmatpush3.bf16.msra.mxu1 %v2586_v9  ;;  %2418 = vmatprep.mubr.msk.f32.mxu1 %vm77_vm0, %v2889_v5 }
  0x34   :  { %2591 = vmatprep.subr.bf16.mxu1 %v2590_v13 }
  0x37   :  { %2593 = vmatpush3.bf16.msra.mxu1 %v2590_v13 }
  0x38   :  { %2595 = vmatprep.subr.bf16.mxu1 %v2594_v16 }
  0x3a   :  { %2419 = vmatmul.mubr.msk.f32.vlgmr.msra.gmra.mrb[2].mxu1 %vm77_vm0, %v2905_v12 }
  0x3b   :  { %2597 = vmatpush3.bf16.msra.mxu1 %v2594_v16  ;;  %2429 = vmatprep.mubr.msk.f32.mxu1 %vm77_vm0, %v2889_v5 }
  0x3c   :  { %2599 = vmatprep.subr.bf16.mxu1 %v2598_v19 }
  0x3f   :  { %2601 = vmatpush3.bf16.msra.mxu1 %v2598_v19 }
  0x40   :  { %2432 = vmatprep.subr.mxu1 %v2774_v20 }
  0x42   :  { %2430 = vmatmul.mubr.msk.f32.vlgmr.msra.gmra.mrb[4].mxu1 %vm77_vm0, %v2905_v12 }
  0x43   :  { %2434 = vmatprep.mubr.msk.f32.mxu1 %vm2775_vm1, %v2774_v20 }
 0x105   :  { %v2935_v21 = vpop.f32.mrb[0].mxu1 }
 0x106   :  { %v2937_v22 = vpop.f32.mrb[1].mxu1 }
 0x10d   :  { %v2939_v23 = vpop.f32.mrb[2].mxu1 }
 0x10e   :  { %719 = vrot.lane.b32.xlu1 %v2939_v23, %s2776_s3  ;;  %v2943_v24 = vpop.f32.mrb[3].mxu1 }
 0x10f   :  { %2433 = vmatpush3.xpose.msk.msra.mxu1 %vm317_vm2, %v2943_v24 }
 0x110   :  { %2437 = vmatprep.subr.mxu1 %v2774_v20 }
 0x112   :  { %717 = vrot.lane.b32.xlu1 %v2935_v21, %s2776_s3  ;;  %2435 = vmatmul.mubr.msk.f32.vlgmr.msra.gmra.mrb[6].mxu1 %vm317_vm2, %v2937_v22 }
 0x113   :  { %2438 = vmatpush3.xpose.msk.msra.mxu1 %vm317_vm2, %v2939_v23  ;;  %2439 = vmatprep.mubr.msk.f32.mxu1 %vm2775_vm1, %v2774_v20 }
 0x114   :  { %2447 = vmatprep.subr.mxu1 %v2774_v20 }
 0x115   :  { %v2961_v25 = vpop.f32.mrb[4].mxu1 }
 0x116   :  { %2440 = vmatmul.mubr.msk.f32.vlgmr.msra.gmra.mrb[8].mxu1 %vm317_vm2, %v2935_v21  ;;  %v2963_v26 = vpop.f32.mrb[5].mxu1 }
 0x117   :  { %2449 = vmatprep.mubr.msk.f32.mxu1 %vm2775_vm1, %v2774_v20  ;;  %2448 = vmatpush3.msra.mxu1 %v2961_v25 }
 0x118   :  { %2443 = vmatpush3.msra.mxu0 %v2963_v26  ;;  %2457 = vmatprep.subr.mxu1 %v2774_v20 }
 0x119   :  { %2452 = vmatprep.subr.mxu0 %v2774_v20 }
 0x180   :  { %v720_v43 = vpop.permute.xlu1 %719 }
 0x184   :  { %v718_v45 = vpop.permute.xlu1 %717 }
 0x1e5   :  { %v390_v27 = vpop.f32.mrb[6].mxu1 }
 0x1e6   :  { %v2436_v28 = vpop.f32.mrb[7].mxu1  ;;  %v470_v37 = vsel %vm317_vm2, %v390_v27, -inf }
 0x1e9   :  { %v466_v29 = vpop.f32.mrb[8].mxu1 }
 0x1ea   :  { %v2441_v30 = vpop.f32.mrb[9].mxu1  ;;  %v473_v31 = vsel %vm317_vm2, %v466_v29, -inf }
 0x1eb   :  { %474 = vmax.xlane.f32.xlu0 %v473_v31 }
 0x278   :  { %v475_v32 = vpop.xlane.xlu0 %474 }
 0x279   :  { %v477_v33 = vsub.f32 %v466_v29, %v475_v32 }
 0x27b   :  { %v480_v34 = vmul.f32 1.442695, %v477_v33 }
 0x27d   :  { %2658 = vpow2.f32 %v480_v34 }
 0x287   :  { %v2659_v35 = vpop.eup %2658 }
 0x288   :  { %v485_v36 = vsel %vm317_vm2, %v2659_v35, 0.0 }
 0x289   :  { %486 = vadd.xlane.f32.xlu0 %v485_v36 }
 0x28d   :  { %471 = vmax.xlane.f32.xlu0 %v470_v37 }
 0x2a3   :  { %641 = vrot.lane.b32.xlu0 %v2943_v24, %s2776_s3 }
 0x2a7   :  { %639 = vrot.lane.b32.xlu0 %v2937_v22, %s2776_s3 }
 0x316   :  { %v487_v38 = vpop.xlane.xlu0 %486 }
 0x317   :  { %2660 = vrcp.f32 %v487_v38  ;;  %v971_v38 = vld [vmem:[%s3210_s4 + $0x8] sm:$0xff] }
 0x31a   :  { %v472_v39 = vpop.xlane.xlu0 %471 }
 0x31b   :  { %v476_v40 = vsub.f32 %v390_v27, %v472_v39  ;;  %v638_v39 = vld [vmem:[%s3210_s4] sm:$0xff] }
 0x31d   :  { %v478_v41 = vmul.f32 1.442695, %v476_v40 }
 0x31e   :  { %v642_v51 = vpop.permute.xlu0 %641 }
 0x31f   :  { %2662 = vpow2.f32 %v478_v41 }
 0x321   :  { %v2661_v42 = vpop.eup %2660 }
 0x322   :  { %v491_v44 = vmul.f32 %v2661_v42, %v2659_v35  ;;  %v640_v53 = vpop.permute.xlu0 %639 }
 0x324   :  { %2450 = vmatmul.mubr.msk.f32.vlgmr.msra.gmra.mrb[10].mxu1 %vm317_vm2, %v491_v44 }
 0x325   :  { %2458 = vmatpush3.xpose.msk.msra.mxu1 %vm317_vm2, %v720_v43  ;;  %2459 = vmatprep.mubr.msk.f32.mxu1 %vm2775_vm1, %v2774_v20 }
 0x326   :  { %2467 = vmatprep.subr.mxu1 %v2774_v20 }
 0x328   :  { %2460 = vmatmul.mubr.msk.f32.vlgmr.msra.gmra.mrb[12].mxu1 %vm317_vm2, %v718_v45 }
 0x329   :  { %v2663_v46 = vpop.eup %2662  ;;  %2469 = vmatprep.mubr.msk.f32.mxu1 %vm2775_vm1, %v2774_v20 }
 0x32a   :  { %v482_v47 = vsel %vm317_vm2, %v2663_v46, 0.0 }
 0x32b   :  { %483 = vadd.xlane.f32.xlu1 %v482_v47 }
 0x33c   :  { %895 = vrot.lane.b32.xlu1 %v2961_v25, %s2776_s3 }
 0x340   :  { %1136 = vrot.lane.b32.xlu1 %v2943_v24, %s2777_s25 }
 0x344   :  { %1214 = vrot.lane.b32.xlu1 %v2939_v23, %s2777_s25 }
 0x3b8   :  { %v484_v48 = vpop.xlane.xlu1 %483 }
 0x3b9   :  { %2664 = vrcp.f32 %v484_v48 }
 0x3bc   :  { %v896_v49 = vpop.permute.xlu1 %895 }
 0x3bd   :  { %2468 = vmatpush3.msra.mxu1 %v896_v49 }
 0x3be   :  { %2482 = vmatprep.subr.mxu1 %v2774_v20 }
 0x3c0   :  { %v1137_v6 = vpop.permute.xlu1 %1136 }
 0x3c3   :  { %v2665_v50 = vpop.eup %2664 }
 0x3c4   :  { %v490_v52 = vmul.f32 %v2665_v50, %v2663_v46  ;;  %v1215_v7 = vpop.permute.xlu1 %1214 }
 0x3c6   :  { %2445 = vmatmul.mubr.msk.f32.vlgmr.msra.gmra.mrb[0].mxu0 %vm317_vm2, %v490_v52 }
 0x3c7   :  { %2453 = vmatpush3.xpose.msk.msra.mxu0 %vm317_vm2, %v642_v51  ;;  %2454 = vmatprep.mubr.msk.f32.mxu0 %vm2775_vm1, %v2774_v20 }
 0x3c8   :  { %2462 = vmatprep.subr.mxu0 %v2774_v20 }
 0x3ca   :  { %2455 = vmatmul.mubr.msk.f32.vlgmr.msra.gmra.mrb[2].mxu0 %vm317_vm2, %v640_v53 }
 0x3cb   :  { %2464 = vmatprep.mubr.msk.f32.mxu0 %vm2775_vm1, %v2774_v20 }
 0x3f7   :  { %v3000_v54 = vpop.f32.mrb[10].mxu1 }
 0x3f8   :  { %v2451_v55 = vpop.f32.mrb[11].mxu1 }
 0x3fb   :  { %v791_v56 = vpop.f32.mrb[12].mxu1 }
 0x3fc   :  { %v2461_v57 = vpop.f32.mrb[13].mxu1  ;;  %v798_v58 = vsel %vm317_vm2, %v791_v56, -inf }
 0x3fd   :  { %799 = vmax.xlane.f32.xlu0 %v798_v58 }
 0x413   :  { %1134 = vrot.lane.b32.xlu0 %v2937_v22, %s2777_s25 }
 0x48a   :  { %v800_v59 = vpop.xlane.xlu0 %799 }
 0x48b   :  { %v802_v60 = vsub.f32 %v791_v56, %v800_v59 }
 0x48d   :  { %v805_v61 = vmul.f32 1.442695, %v802_v60 }
 0x48e   :  { %v1135_v11 = vpop.permute.xlu0 %1134 }
 0x48f   :  { %2666 = vpow2.f32 %v805_v61 }
 0x499   :  { %v2667_v62 = vpop.eup %2666  ;;  %v3005_v63 = vpop.f32.mrb[0].mxu0 }
 0x49a   :  { %v2446_v0 = vpop.f32.mrb[1].mxu0  ;;  %v810_v1 = vsel %vm317_vm2, %v2667_v62, 0.0 }
 0x49b   :  { %811 = vadd.xlane.f32.xlu1 %v810_v1 }
 0x49d   :  { %v713_v2 = vpop.f32.mrb[2].mxu0 }
 0x49e   :  { %v2456_v3 = vpop.f32.mrb[3].mxu0  ;;  %v795_v4 = vsel %vm317_vm2, %v713_v2, -inf }
 0x4ac   :  { %1212 = vrot.lane.b32.xlu1 %v2935_v21, %s2777_s25 }
 0x4d0   :  { %796 = vmax.xlane.f32.xlu1 %v795_v4 }
 0x4e1   :  { %818 = vrot.lane.b32.xlu1 %v2963_v26, %s2776_s3 }
 0x528   :  { %v812_v8 = vpop.xlane.xlu1 %811 }
 0x529   :  { %2668 = vrcp.f32 %v812_v8 }
 0x52c   :  { %v1213_v13 = vpop.permute.xlu1 %1212 }
 0x533   :  { %v2669_v9 = vpop.eup %2668 }
 0x534   :  { %v816_v10 = vmul.f32 %v2669_v9, %v2667_v62 }
 0x536   :  { %2470 = vmatmul.mubr.msk.f32.vlgmr.msra.gmra.mrb[14].mxu1 %vm317_vm2, %v816_v10 }
 0x537   :  { %2483 = vmatpush3.xpose.msk.msra.mxu1 %vm317_vm2, %v1137_v6  ;;  %2484 = vmatprep.mubr.msk.f32.mxu1 %vm2775_vm1, %v2774_v20 }
 0x538   :  { %2487 = vmatprep.subr.mxu1 %v2774_v20 }
 0x53a   :  { %2485 = vmatmul.mubr.msk.f32.vlgmr.msra.gmra.mrb[16].mxu1 %vm317_vm2, %v1135_v11 }
 0x53b   :  { %2488 = vmatpush3.xpose.msk.msra.mxu1 %vm317_vm2, %v1215_v7  ;;  %2489 = vmatprep.mubr.msk.f32.mxu1 %vm2775_vm1, %v2774_v20 }
 0x53c   :  { %2497 = vmatprep.subr.mxu1 %v2774_v20 }
 0x53e   :  { %2490 = vmatmul.mubr.msk.f32.vlgmr.msra.gmra.mrb[18].mxu1 %vm317_vm2, %v1213_v13 }
 0x53f   :  { %2499 = vmatprep.mubr.msk.f32.mxu1 %vm2775_vm1, %v2774_v20 }
 0x55d   :  { %v797_v14 = vpop.xlane.xlu1 %796 }
 0x55e   :  { %v801_v15 = vsub.f32 %v713_v2, %v797_v14 }
 0x560   :  { %v803_v16 = vmul.f32 1.442695, %v801_v15 }
 0x561   :  { %v819_v17 = vpop.permute.xlu1 %818 }
 0x562   :  { %2670 = vpow2.f32 %v803_v16  ;;  %2463 = vmatpush3.msra.mxu0 %v819_v17 }
 0x563   :  { %2472 = vmatprep.subr.mxu0 %v971_v38 }
 0x56c   :  { %v2671_v18 = vpop.eup %2670 }
 0x56d   :  { %v807_v19 = vsel %vm317_vm2, %v2671_v18, 0.0 }
 0x56e   :  { %808 = vadd.xlane.f32.xlu0 %v807_v19 }
 0x5fb   :  { %v809_v27 = vpop.xlane.xlu0 %808 }
 0x5fc   :  { %2672 = vrcp.f32 %v809_v27 }
 0x606   :  { %v2673_v28 = vpop.eup %2672 }
 0x607   :  { %v815_v29 = vmul.f32 %v2673_v28, %v2671_v18 }
 0x609   :  { %2465 = vmatmul.mubr.msk.f32.vlgmr.msra.gmra.mrb[4].mxu0 %vm317_vm2, %v815_v29  ;;  %v967_v30 = vpop.f32.mrb[14].mxu1 }
 0x60a   :  { %v2471_v31 = vpop.f32.mrb[15].mxu1  ;;  %2473 = vmatpush3.msra.mxu0 %v971_v38 }
 0x60b   :  { %2477 = vmatprep.subr.mxu0 %v638_v39 }
 0x60d   :  { %v1208_v32 = vpop.f32.mrb[16].mxu1 }
 0x60e   :  { %v2486_v33 = vpop.f32.mrb[17].mxu1  ;;  %v1290_v34 = vsel %vm317_vm2, %v1208_v32, -inf }
 0x60f   :  { %1291 = vmax.xlane.f32.xlu0 %v1290_v34 }
 0x611   :  { %v1286_v35 = vpop.f32.mrb[18].mxu1 }
 0x612   :  { %v2491_v36 = vpop.f32.mrb[19].mxu1  ;;  %v1293_v37 = vsel %vm317_vm2, %v1286_v35, -inf }
 0x613   :  { %1294 = vmax.xlane.f32.xlu0 %v1293_v37 }
 0x69c   :  { %v1292_v40 = vpop.xlane.xlu0 %1291 }
 0x69d   :  { %v1296_v41 = vsub.f32 %v1208_v32, %v1292_v40  ;;  %v1878_v32 = vld [vmem:[%s3210_s4 + $0x18] sm:$0xff] }
 0x69f   :  { %v1298_v42 = vmul.f32 1.442695, %v1296_v41 }
 0x6a0   :  { %v1295_v43 = vpop.xlane.xlu0 %1294 }
 0x6a1   :  { %2674 = vpow2.f32 %v1298_v42  ;;  %v1297_v44 = vsub.f32 %v1286_v35, %v1295_v43 }
 0x6a3   :  { %v1300_v45 = vmul.f32 1.442695, %v1297_v44 }
 0x6a5   :  { %2676 = vpow2.f32 %v1300_v45 }
 0x6ab   :  { %v2675_v46 = vpop.eup %2674 }
 0x6ac   :  { %v1302_v47 = vsel %vm317_vm2, %v2675_v46, 0.0 }
 0x6ad   :  { %1303 = vadd.xlane.f32.xlu0 %v1302_v47 }
 0x6af   :  { %v2677_v48 = vpop.eup %2676 }
 0x6b0   :  { %v1305_v49 = vsel %vm317_vm2, %v2677_v48, 0.0 }
 0x6b1   :  { %1306 = vadd.xlane.f32.xlu1 %v1305_v49 }
 0x6c2   :  { %1548 = vrot.lane.b32.xlu1 %v2937_v22, %s2778_s29 }
 0x6c3   :  { %1312 = vrot.lane.b32.xlu0 %v2963_v26, %s2777_s25 }
 0x6c7   :  { %1388 = vrot.lane.b32.xlu0 %v2961_v25, %s2777_s25 }
 0x6cb   :  { %1550 = vrot.lane.b32.xlu0 %v2943_v24, %s2778_s29 }
 0x6cf   :  { %1628 = vrot.lane.b32.xlu0 %v2939_v23, %s2778_s29 }
 0x6d3   :  { %1626 = vrot.lane.b32.xlu0 %v2935_v21, %s2778_s29  ;;  %v1464_v21 = vld [vmem:[%s3210_s4 + $0x10] sm:$0xff] }
 0x6dc   :  { %v890_v50 = vpop.f32.mrb[4].mxu0 }
 0x6dd   :  { %v2466_v51 = vpop.f32.mrb[5].mxu0  ;;  %2474 = vmatprep.mubr.msk.f32.mxu0 %vm317_vm2, %v890_v50  ;;  %v2009_v50 = vld [vmem:[%s3213_s7] sm:$0xff] }
 0x6de   :  { %2475 = vmatmul.mubr.msk.f32.vlgmr.msra.gmra.mrb[6].mxu0 %vm317_vm2, %v967_v30  ;;  %v2010_v51 = vld [vmem:[%s3213_s7 + $0x8] sm:$0xff] }
 0x6df   :  { %2479 = vmatprep.mubr.msk.f32.mxu0 %vm317_vm2, %v3005_v63  ;;  %2478 = vmatpush3.msra.mxu0 %v638_v39 }
 0x6e0   :  { %2492 = vmatprep.subr.mxu0 %v2774_v20 }
 0x6e6   :  { %2480 = vmatmul.mubr.msk.f32.vlgmr.msra.gmra.mrb[6].mxu0 %vm317_vm2, %v3000_v54 }
 0x6e7   :  { %2494 = vmatprep.mubr.msk.f32.mxu0 %vm2775_vm1, %v2774_v20 }
 0x73a   :  { %v1304_v22 = vpop.xlane.xlu0 %1303 }
 0x73b   :  { %2678 = vrcp.f32 %v1304_v22  ;;  %v2602_v22 = vpack.c.bf16 %v2010_v51, %v2009_v50 }
 0x73e   :  { %v1307_v23 = vpop.xlane.xlu1 %1306  ;;  %v1313_v24 = vpop.permute.xlu0 %1312 }
 0x73f   :  { %2680 = vrcp.f32 %v1307_v23  ;;  %2493 = vmatpush3.msra.mxu0 %v1313_v24  ;;  %v2012_v23 = vld [vmem:[%s3213_s7 + $0x18] sm:$0xff] }
 0x740   :  { %2502 = vmatprep.subr.mxu0 %v1464_v21 }
 0x742   :  { %v1389_v52 = vpop.permute.xlu0 %1388  ;;  %v1549_v58 = vpop.permute.xlu1 %1548 }
 0x743   :  { %2498 = vmatpush3.msra.mxu1 %v1389_v52  ;;  %v2103_v52 = vld [vmem:[%s3215_s9] sm:$0xff] }
 0x744   :  { %2507 = vmatprep.subr.mxu1 %v2774_v20 }
 0x745   :  { %v2679_v53 = vpop.eup %2678 }
 0x746   :  { %v1310_v54 = vmul.f32 %v2679_v53, %v2675_v46  ;;  %v1551_v57 = vpop.permute.xlu0 %1550  ;;  %v2104_v53 = vld [vmem:[%s3215_s9 + $0x8] sm:$0xff] }
 0x748   :  { %2495 = vmatmul.mubr.msk.f32.vlgmr.msra.gmra.mrb[8].mxu0 %vm317_vm2, %v1310_v54  ;;  %v2105_v54 = vld [vmem:[%s3215_s9 + $0x10] sm:$0xff] }
 0x749   :  { %v2681_v55 = vpop.eup %2680  ;;  %2503 = vmatpush3.msra.mxu0 %v1464_v21  ;;  %v2011_v21 = vld [vmem:[%s3213_s7 + $0x10] sm:$0xff] }
 0x74a   :  { %v1311_v56 = vmul.f32 %v2681_v55, %v2677_v48  ;;  %2512 = vmatprep.subr.mxu0 %v2774_v20  ;;  %v1629_v61 = vpop.permute.xlu0 %1628  ;;  %v2606_v24 = vpack.c.bf16 %v2012_v23, %v2011_v21  ;;  %v2610_v55 = vpack.c.bf16 %v2104_v53, %v2103_v52 }
 0x74c   :  { %2500 = vmatmul.mubr.msk.f32.vlgmr.msra.gmra.mrb[20].mxu1 %vm317_vm2, %v1311_v56  ;;  %v2106_v56 = vld [vmem:[%s3215_s9 + $0x18] sm:$0xff] }
 0x74d   :  { %2508 = vmatpush3.xpose.msk.msra.mxu1 %vm317_vm2, %v1551_v57  ;;  %2509 = vmatprep.mubr.msk.f32.mxu1 %vm2775_vm1, %v2774_v20  ;;  %v2614_v57 = vpack.c.bf16 %v2106_v56, %v2105_v54 }
 0x74e   :  { %2517 = vmatprep.subr.mxu1 %v2774_v20  ;;  %v1627_v0 = vpop.permute.xlu0 %1626 }
 0x750   :  { %2510 = vmatmul.mubr.msk.f32.vlgmr.msra.gmra.mrb[22].mxu1 %vm317_vm2, %v1549_v58  ;;  %v2107_v58 = vld [vmem:[%s3215_s9 + $0x20] sm:$0xff] }
 0x751   :  { %2519 = vmatprep.mubr.msk.f32.mxu1 %vm2775_vm1, %v2774_v20 }
 0x81b   :  { %v1384_v59 = vpop.f32.mrb[8].mxu0 }
 0x81c   :  { %v2496_v60 = vpop.f32.mrb[9].mxu0  ;;  %2504 = vmatprep.mubr.msk.f32.mxu0 %vm317_vm2, %v1384_v59  ;;  %v2108_v59 = vld [vmem:[%s3215_s9 + $0x28] sm:$0xff] }
 0x81d   :  { %v2618_v60 = vpack.c.bf16 %v2108_v59, %v2107_v58 }
 0x81f   :  { %v1460_v62 = vpop.f32.mrb[20].mxu1 }
 0x820   :  { %v2501_v63 = vpop.f32.mrb[21].mxu1  ;;  %2505 = vmatmul.mubr.msk.f32.vlgmr.msra.gmra.mrb[6].mxu0 %vm317_vm2, %v1460_v62  ;;  %v2110_v62 = vld [vmem:[%s3215_s9 + $0x38] sm:$0xff] }
 0x821   :  { %2513 = vmatpush3.xpose.msk.msra.mxu0 %vm317_vm2, %v1629_v61  ;;  %2514 = vmatprep.mubr.msk.f32.mxu0 %vm2775_vm1, %v2774_v20  ;;  %v2109_v61 = vld [vmem:[%s3215_s9 + $0x30] sm:$0xff] }
 0x822   :  { %2522 = vmatprep.subr.mxu0 %v2774_v20  ;;  %v2622_v63 = vpack.c.bf16 %v2110_v62, %v2109_v61  ;;  %v2311_v61 = vld [vmem:[%s3217_s11] ss:$0 sm:$0xff] }
 0x823   :  { %v1622_v1 = vpop.f32.mrb[22].mxu1 }
 0x824   :  { %v2511_v2 = vpop.f32.mrb[23].mxu1  ;;  %2515 = vmatmul.mubr.msk.f32.vlgmr.msra.gmra.mrb[10].mxu0 %vm317_vm2, %v1627_v0  ;;  %v1704_v3 = vsel %vm317_vm2, %v1622_v1, -inf  ;;  %v2111_v0 = vld [vmem:[%s3215_s9 + $0x40] sm:$0xff] }
 0x825   :  { %1705 = vmax.xlane.f32.xlu0 %v1704_v3  ;;  %2524 = vmatprep.mubr.msk.f32.mxu0 %vm2775_vm1, %v2774_v20  ;;  %v2113_v3 = vld [vmem:[%s3215_s9 + $0x50] sm:$0xff] }
 0x8b2   :  { %v1706_v4 = vpop.xlane.xlu0 %1705 }
 0x8b3   :  { %v1710_v6 = vsub.f32 %v1622_v1, %v1706_v4  ;;  %v2112_v1 = vld [vmem:[%s3215_s9 + $0x48] sm:$0xff]  ;;  %v2114_v4 = vld [vmem:[%s3215_s9 + $0x58] sm:$0xff] }
 0x8b4   :  { %v2626_v2 = vpack.c.bf16 %v2112_v1, %v2111_v0  ;;  %v2312_v1 = vld [vmem:[%s3218_s12] ss:$0 sm:$0xff] }
 0x8b5   :  { %v1712_v7 = vmul.f32 1.442695, %v1710_v6  ;;  %v2630_v6 = vpack.c.bf16 %v2114_v4, %v2113_v3 }
 0x8b7   :  { %2682 = vpow2.f32 %v1712_v7  ;;  %v2115_v7 = vld [vmem:[%s3215_s9 + $0x60] sm:$0xff] }
 0x8c1   :  { %v2683_v8 = vpop.eup %2682 }
 0x8c2   :  { %v1716_v9 = vsel %vm317_vm2, %v2683_v8, 0.0 }
 0x8c3   :  { %1717 = vadd.xlane.f32.xlu0 %v1716_v9 }
 0x8f7   :  { %v1700_v10 = vpop.f32.mrb[10].mxu0 }
 0x8f8   :  { %v2516_v11 = vpop.f32.mrb[11].mxu0  ;;  %v1707_v13 = vsel %vm317_vm2, %v1700_v10, -inf }
 0x8f9   :  { %1708 = vmax.xlane.f32.xlu1 %v1707_v13 }
 0x90a   :  { %1802 = vrot.lane.b32.xlu1 %v2961_v25, %s2778_s29 }
 0x950   :  { %v1718_v19 = vpop.xlane.xlu0 %1717 }
 0x986   :  { %v1709_v14 = vpop.xlane.xlu1 %1708 }
 0x987   :  { %v1711_v15 = vsub.f32 %v1700_v10, %v1709_v14 }
 0x989   :  { %v1714_v16 = vmul.f32 1.442695, %v1711_v15 }
 0x98a   :  { %v1803_v20 = vpop.permute.xlu1 %1802 }
 0x98b   :  { %2684 = vpow2.f32 %v1714_v16  ;;  %2523 = vmatpush3.msra.mxu0 %v1803_v20 }
 0x98c   :  { %2686 = vrcp.f32 %v1718_v19  ;;  %2527 = vmatprep.subr.mxu0 %v1878_v32  ;;  %v2306_v19 = vld [vmem:[%s3212_s6] ss:$0 sm:$0xff] }
 0x995   :  { %v2685_v17 = vpop.eup %2684 }
 0x996   :  { %v1719_v18 = vsel %vm317_vm2, %v2685_v17, 0.0  ;;  %v2687_v28 = vpop.eup %2686 }
 0x997   :  { %1720 = vadd.xlane.f32.xlu0 %v1719_v18  ;;  %v1724_v29 = vmul.f32 %v2687_v28, %v2683_v8  ;;  %v2116_v8 = vld [vmem:[%s3215_s9 + $0x68] sm:$0xff] }
 0x998   :  { %v2634_v9 = vpack.c.bf16 %v2116_v8, %v2115_v7 }
 0x9ad   :  { %1726 = vrot.lane.b32.xlu0 %v2963_v26, %s2778_s29 }
 0xa24   :  { %v1721_v27 = vpop.xlane.xlu0 %1720 }
 0xa25   :  { %2688 = vrcp.f32 %v1721_v27 }
 0xa28   :  { %v1727_v25 = vpop.permute.xlu0 %1726 }
 0xa29   :  { %2518 = vmatpush3.msra.mxu1 %v1727_v25 }
 0xa2a   :  { %2520 = vmatmul.mubr.msk.f32.vlgmr.msra.gmra.mrb[24].mxu1 %vm317_vm2, %v1724_v29  ;;  %2603 = vmatprep.subr.bf16.mxu1 %v2602_v22 }
 0xa2b   :  { %2605 = vmatpush3.bf16.msra.mxu1 %v2602_v22 }
 0xa2c   :  { %2607 = vmatprep.subr.bf16.mxu1 %v2606_v24 }
 0xa2f   :  { %v2689_v30 = vpop.eup %2688  ;;  %2609 = vmatpush3.bf16.msra.mxu1 %v2606_v24 }
 0xa30   :  { %v1725_v31 = vmul.f32 %v2689_v30, %v2685_v17  ;;  %v2305_v17 = vld [vmem:[%s3211_s5] ss:$0 sm:$0xff] }
 0xa32   :  { %2525 = vmatmul.mubr.msk.f32.vlgmr.msra.gmra.mrb[12].mxu0 %vm317_vm2, %v1725_v31 }
 0xa33   :  { %2528 = vmatpush3.msra.mxu0 %v1878_v32  ;;  %v2117_v32 = vld [vmem:[%s3215_s9 + $0x70] sm:$0xff] }
 0xa34   :  { %2611 = vmatprep.subr.bf16.mxu0 %v2610_v55 }
 0xafd   :  { %v1798_v26 = vpop.f32.mrb[24].mxu1 }
 0xafe   :  { %v2521_v33 = vpop.f32.mrb[25].mxu1  ;;  %2529 = vmatprep.mubr.msk.f32.mxu0 %vm317_vm2, %v1798_v26  ;;  %v2118_v26 = vld [vmem:[%s3215_s9 + $0x78] sm:$0xff] }
 0xaff   :  { %v2638_v33 = vpack.c.bf16 %v2118_v26, %v2117_v32 }
 0xb05   :  { %v1874_v34 = vpop.f32.mrb[12].mxu0 }
 0xb06   :  { %v2526_v35 = vpop.f32.mrb[13].mxu0  ;;  %2530 = vmatmul.mubr.msk.f32.vlgmr.msra.gmra.mrb[6].mxu0 %vm317_vm2, %v1874_v34  ;;  %v2307_v34 = vld [vmem:[#allocation5] ss:$0 sm:$0xff] }
 0xb07   :  { %2613 = vmatpush3.bf16.msra.mxu0 %v2610_v55 }
 0xb08   :  { %2615 = vmatprep.subr.bf16.mxu0 %v2614_v57 }
 0xb0b   :  { %2617 = vmatpush3.bf16.msra.mxu0 %v2614_v57 }
 0xb0c   :  { %2619 = vmatprep.subr.bf16.mxu0 %v2618_v60 }
 0xb0f   :  { %2621 = vmatpush3.bf16.msra.mxu0 %v2618_v60 }
 0xb10   :  { %2623 = vmatprep.subr.bf16.mxu0 %v2622_v63 }
 0xb13   :  { %2625 = vmatpush3.bf16.msra.mxu0 %v2622_v63 }
 0xb14   :  { %2627 = vmatprep.subr.bf16.mxu0 %v2626_v2 }
 0xb17   :  { %2629 = vmatpush3.bf16.msra.mxu0 %v2626_v2 }
 0xb18   :  { %2631 = vmatprep.subr.bf16.mxu0 %v2630_v6 }
 0xb1b   :  { %2633 = vmatpush3.bf16.msra.mxu0 %v2630_v6 }
 0xb1c   :  { %2635 = vmatprep.subr.bf16.mxu0 %v2634_v9 }
 0xb1f   :  { %2637 = vmatpush3.bf16.msra.mxu0 %v2634_v9 }
 0xb20   :  { %2639 = vmatprep.subr.bf16.mxu0 %v2638_v33 }
 0xb23   :  { %2641 = vmatpush3.bf16.msra.mxu0 %v2638_v33 }
 0xbd9   :  { %v2531_v36 = vpop.f32.mrb[6].mxu0 }
 0xbda   :  { %v1963_v37 = vadd.f32 %v2531_v36, %v2905_v12  ;;  %v1951_v38 = vpop.f32.mrb[7].mxu0 }
 0xbdb   :  { %v1962_v39 = vadd.f32 %v1951_v38, %v2889_v5 }
 0xbdc   :  { %v1969_v40 = vsel %vm77_vm0, %v1963_v37, 0.0 }
 0xbdd   :  { %1970 = vadd.xlane.f32.xlu1 %v1969_v40  ;;  %v1966_v41 = vsel %vm77_vm0, %v1962_v39, 0.0 }
 0xbde   :  { %1967 = vadd.xlane.f32.xlu0 %v1966_v41  ;;  %v2310_v41 = vld [vmem:[%s3216_s10] ss:$0 sm:$0xff] }
 0xc6a   :  { %v1971_v42 = vpop.xlane.xlu1 %1970 }
 0xc6b   :  { %v1974_v43 = vmul.f32 0.03125, %v1971_v42  ;;  %v1968_v44 = vpop.xlane.xlu0 %1967 }
 0xc6c   :  { %v1973_v45 = vmul.f32 0.03125, %v1968_v44 }
 0xc6d   :  { %v3101_v46 = vsub.f32 %v1963_v37, %v1974_v43 }
 0xc6e   :  { %v1975_v47 = vsub.f32 %v1962_v39, %v1973_v45 }
 0xc6f   :  { %v1978_v12 = vmul.f32 %v3101_v46, %v3101_v46 }
 0xc70   :  { %v1977_v48 = vmul.f32 %v1975_v47, %v1975_v47 }
 0xc71   :  { %v1982_v5 = vsel %vm77_vm0, %v1978_v12, 0.0 }
 0xc72   :  { %v1979_v49 = vsel %vm77_vm0, %v1977_v48, 0.0 }
 0xc73   :  { %1980 = vadd.xlane.f32.xlu0 %v1979_v49 }
 0xc77   :  { %1983 = vadd.xlane.f32.xlu0 %v1982_v5 }
 0xd00   :  { %v1981_v10 = vpop.xlane.xlu0 %1980 }
 0xd01   :  { %v1985_v11 = vmul.f32 0.03125, %v1981_v10 }
 0xd03   :  { %v1987_v13 = vadd.f32 1e-05, %v1985_v11 }
 0xd04   :  { %v1984_v14 = vpop.xlane.xlu0 %1983 }
 0xd05   :  { %2690 = vrsqrt.f32 %v1987_v13  ;;  %v1986_v15 = vmul.f32 0.03125, %v1984_v14 }
 0xd07   :  { %v1988_v16 = vadd.f32 1e-05, %v1986_v15 }
 0xd09   :  { %2692 = vrsqrt.f32 %v1988_v16 }
 0xd0f   :  { %v2691_v20 = vpop.eup %2690 }
 0xd10   :  { %v1991_v18 = vmul.f32 %v2691_v20, %v1975_v47 }
 0xd12   :  { %v1999_v27 = vmul.f32 %v2305_v17, %v1991_v18 }
 0xd13   :  { %v2693_v28 = vpop.eup %2692 }
 0xd14   :  { %v1992_v29 = vmul.f32 %v2693_v28, %v3101_v46  ;;  %v2007_v25 = vadd.f32 %v2306_v19, %v1999_v27 }
 0xd16   :  { %v2000_v30 = vmul.f32 %v2305_v17, %v1992_v29  ;;  %2540 = vmatprep.mubr.msk.f32.mxu1 %vm77_vm0, %v2007_v25 }
 0xd18   :  { %v2008_v31 = vadd.f32 %v2306_v19, %v2000_v30 }
 0xd1a   :  { %2541 = vmatmul.mubr.msk.f32.vlgmr.msra.gmra.mrb[26].mxu1 %vm77_vm0, %v2008_v31 }
 0xded   :  { %v2542_v35 = vpop.f32.mrb[26].mxu1 }
 0xdee   :  { %v2098_v36 = vadd.f32 %v2542_v35, %v2307_v34  ;;  %v2092_v37 = vpop.f32.mrb[27].mxu1 }
 0xdef   :  { %v2093_v38 = vadd.f32 %v2307_v34, %v2092_v37 }
 0xdf0   :  { %v2102_v40 = vmax.f32 %v2098_v36, 0.0 }
 0xdf1   :  { %v2101_v39 = vmax.f32 %v2093_v38, 0.0 }
 0xdf3   :  { %2575 = vmatprep.mubr.f32.mxu0 %v2101_v39 }
 0xdf4   :  { %2576 = vmatmul.mubr.f32.vlgmr.msra.gmra.mrb[14].mxu0 %v2102_v40 }
 0xec7   :  { %v2577_v42 = vpop.f32.mrb[14].mxu0 }
 0xec8   :  { %v2198_v43 = vadd.f32 %v2577_v42, %v2310_v41  ;;  %v2192_v44 = vpop.f32.mrb[15].mxu0 }
 0xec9   :  { %v2193_v45 = vadd.f32 %v2310_v41, %v2192_v44 }
 0xeca   :  { %v2202_v46 = vadd.f32 %v2198_v43, %v2008_v31 }
 0xecb   :  { %v2201_v47 = vadd.f32 %v2193_v45, %v2007_v25 }
 0xecc   :  { %v2208_v48 = vsel %vm77_vm0, %v2202_v46, 0.0 }
 0xecd   :  { %2209 = vadd.xlane.f32.xlu1 %v2208_v48  ;;  %v2205_v49 = vsel %vm77_vm0, %v2201_v47, 0.0 }
 0xece   :  { %2206 = vadd.xlane.f32.xlu0 %v2205_v49 }
 0xf5a   :  { %v2210_v12 = vpop.xlane.xlu1 %2209 }
 0xf5b   :  { %v2212_v5 = vmul.f32 0.03125, %v2210_v12  ;;  %v2207_v50 = vpop.xlane.xlu0 %2206 }
 0xf5c   :  { %v2211_v51 = vmul.f32 0.03125, %v2207_v50 }
 0xf5d   :  { %v2214_v22 = vsub.f32 %v2202_v46, %v2212_v5 }
 0xf5e   :  { %v2213_v21 = vsub.f32 %v2201_v47, %v2211_v51 }
 0xf5f   :  { %v2216_v23 = vmul.f32 %v2214_v22, %v2214_v22 }
 0xf60   :  { %v2215_v24 = vmul.f32 %v2213_v21, %v2213_v21 }
 0xf61   :  { %v2220_v52 = vsel %vm77_vm0, %v2216_v23, 0.0 }
 0xf62   :  { %2221 = vadd.xlane.f32.xlu1 %v2220_v52  ;;  %v2217_v53 = vsel %vm77_vm0, %v2215_v24, 0.0 }
 0xf63   :  { %2218 = vadd.xlane.f32.xlu0 %v2217_v53 }
 0xfef   :  { %v2222_v54 = vpop.xlane.xlu1 %2221 }
 0xff0   :  { %v2224_v55 = vmul.f32 0.03125, %v2222_v54  ;;  %v2219_v56 = vpop.xlane.xlu0 %2218 }
 0xff1   :  { %v2223_v57 = vmul.f32 0.03125, %v2219_v56 }
 0xff2   :  { %v2226_v58 = vadd.f32 1e-05, %v2224_v55 }
 0xff3   :  { %v2225_v59 = vadd.f32 1e-05, %v2223_v57 }
 0xff4   :  { %2694 = vrsqrt.f32 %v2226_v58 }
 0xff5   :  { %2696 = vrsqrt.f32 %v2225_v59 }
 0xffe   :  { %v2695_v60 = vpop.eup %2694 }
 0xfff   :  { %v2697_v62 = vpop.eup %2696  ;;  %v2230_v63 = vmul.f32 %v2695_v60, %v2214_v22 }
0x1000   :  { %v2229_v0 = vmul.f32 %v2697_v62, %v2213_v21 }
0x1001   :  { %v2238_v2 = vmul.f32 %v2311_v61, %v2230_v63 }
0x1002   :  { %v2237_v3 = vmul.f32 %v2311_v61, %v2229_v0 }
0x1003   :  { %v2246_v4 = vadd.f32 %v2312_v1, %v2238_v2 }
0x1004   :  { %v2245_v6 = vadd.f32 %v2312_v1, %v2237_v3 }
0x1005   :  { %2248 = vst.msk [vmem:[#allocation7 + $0x8] sm:$0xff] %vm77_vm0, %v2246_v4 }
0x1006   :  { %2247 = vst.msk [vmem:[#allocation7] sm:$0xff] %vm77_vm0, %v2245_v6 }
0x1007   :  { %2753 = shalt.err (!%p2750_p6)
}
0x1008   :  { %s2754_s20 = scalar_lea.hbm %s3219_s13, 256 }
0x1009   :  { %p2755_p7 = scmp.ne.s32.totalorder %s3219_s13, %s2754_s20  ;;  %p2758_p8 = scmp.lt.u32.totalorder %s2754_s20, %s3219_s13 }
0x100b   :  { %p2760_p9 = pnand %p2758_p8, %p2755_p7 }
0x100d   :  { %2763 = shalt.err (!%p2760_p9)
}
0x100e   :  { %2260 = dma.vmem_to_hbm [thread:$0]  %s2255_s16, 256, %s3219_s13, [#allocation4], %s2771_s18, %s2771_s18, %s2772_s19  }
0x100f   :  { %2768 = dma.done.wait [#allocation4], 256  }
0x1010   :  { %2769 = vsyncadd [#allocation4], 4294967040 }
0x1011   :  { %2264 = vsyncpa [#allocation3], 1 }
0x1012   :  { %2265 = vsyncpa [#allocation6], 1 }
0x1013   :  { %2266 = vsyncpa [#allocation4], 1 }

</bundles_post_ra>
